<compile_context>
chip_gen: v6e
topology: v6e:2x2x1
jax: 0.10.0
libtpu: 0.0.40
codegen_flags: <defaults>
</compile_context>

<pallas_src>
import functools

import jax
import jax.numpy as jnp
from jax.experimental import pallas as pl
from jax.experimental.pallas import tpu as pltpu

_LANES = 128
_MAX_BLOCK_ROWS = 2048  # 2048 x 128 f32 = 1 MiB per input per pipeline buffer


def _cdiv(a, b):
    return -(-a // b)


def _round_up(x, mult):
    return ((x + mult - 1) // mult) * mult


def _loss_kernel(r_ref, t_ref, o_ref, *, valid_rows, tiles_per_split,
                 needs_mask):
    i = pl.program_id(1)

    @pl.when(i == 0)
    def _():
        o_ref[...] = jnp.zeros(o_ref.shape, jnp.float32)

    block_rows = r_ref.shape[0]
    r = r_ref[...].astype(jnp.float32)   # bf16 streams natively, upcast here
    t = t_ref[...].astype(jnp.float32)
    d = r - t
    d2 = d * d
    t_zero = t == 0.0

    if needs_mask:
        # Logical (unclamped) global row offset of this block; rows at or
        # beyond `valid_rows` are garbage (partial or duplicated last block)
        # and must not contribute to ANY of the three accumulators.
        row_start = (pl.program_id(0) * tiles_per_split + i) * block_rows
        rid = jax.lax.broadcasted_iota(jnp.int32, (block_rows, _LANES), 0)
        valid = (rid + row_start) < valid_rows
        is_zero = valid & t_zero
        is_nonzero = valid & (~t_zero)
    else:
        is_zero = t_zero
        is_nonzero = ~t_zero

    n_sub = block_rows // 8

    def fold(x):
        # (block_rows, 128) -> (8, 128): layout-preserving reshape, then pure
        # VALU vreg adds (no cross-lane XLU work per step).
        return jnp.sum(x.reshape(n_sub, 8, _LANES), axis=0)

    # Accumulate directly into the resident output block (same block index
    # across the "arbitrary" axis): sum_sq_zero, sum_sq_nonzero, count_nonzero.
    o_ref[0, 0] += fold(jnp.where(is_zero, d2, 0.0))
    o_ref[0, 1] += fold(jnp.where(is_nonzero, d2, 0.0))
    o_ref[0, 2] += fold(jnp.where(is_nonzero, 1.0, 0.0))


def _run_kernel(r2, t2, *, num_splits, tiles_per_split, block_rows,
                valid_rows, needs_mask, max_block):
    kernel = functools.partial(_loss_kernel, valid_rows=valid_rows,
                               tiles_per_split=tiles_per_split,
                               needs_mask=needs_mask)

    def in_idx(s, i):
        # Clamp so the DMA never starts past the end of the array; the kernel
        # masks any duplicated / partial rows out of the accumulators.
        return (jnp.minimum(s * tiles_per_split + i, max_block), 0)

    in_spec = pl.BlockSpec((block_rows, _LANES), in_idx)
    out_spec = pl.BlockSpec((1, 3, 8, _LANES), lambda s, i: (s, 0, 0, 0))
    return pl.pallas_call(
        kernel,
        out_shape=jax.ShapeDtypeStruct((num_splits, 3, 8, _LANES), jnp.float32),
        grid=(num_splits, tiles_per_split),
        in_specs=[in_spec, in_spec],
        out_specs=out_spec,
        compiler_params=pltpu.CompilerParams(
            dimension_semantics=("parallel", "arbitrary")),
    )(r2, t2)


def _canon(x):
    # f32 / bf16 stream natively (bf16 halves HBM read bytes); everything
    # else is cast to f32 in the wrapper.
    if x.dtype == jnp.float32 or x.dtype == jnp.bfloat16:
        return x
    return x.astype(jnp.float32)


class NEWESTACB3dloss2024:
    """JAX/Pallas re-implementation of the PyTorch loss module."""

    def __init__(self, b, m, n):
        self.zero_weighting = 1.0
        self.nonzero_weighting = 1.0
        self.b, self.m, self.n = b, m, n
        # The (batch, i, j) coordinate columns of transform_to_3d_coordinates
        # are identical for reconstructed/target, so they contribute zero to
        # the MSE numerators; their only effect is the per-row element count
        # of 4, which is folded into the final division.

    @functools.partial(jax.jit, static_argnums=0)
    def __call__(self, reconstructed_image, target_image):
        r = _canon(reconstructed_image).reshape(-1)
        t = _canon(target_image).reshape(-1)
        n_elem = r.shape[0]  # static under jit

        lane_pad = (-n_elem) % _LANES
        if lane_pad:
            # TODO(synk): non-multiple-of-128 sizes take one small pad copy
            # here; the common lane-aligned case streams with zero copies.
            r = jnp.pad(r, (0, lane_pad))
            t = jnp.pad(t, (0, lane_pad))
        rows = (n_elem + lane_pad) // _LANES

        sub = 8 if (r.dtype == jnp.float32 and t.dtype == jnp.float32) else 16
        num_splits = 2 if rows >= 16 else 1      # v7x: use both TensorCores
        tiles_per_split = max(1, _cdiv(rows, num_splits * _MAX_BLOCK_ROWS))
        num_tiles = num_splits * tiles_per_split
        block_rows = min(_MAX_BLOCK_ROWS,
                         _round_up(_cdiv(rows, num_tiles), sub))
        padded_rows = num_tiles * block_rows
        needs_mask = padded_rows != rows
        max_block = (rows - 1) // block_rows   # last block with valid rows

        r2 = r.reshape(rows, _LANES)
        t2 = t.reshape(rows, _LANES)

        parts = _run_kernel(r2, t2, num_splits=num_splits,
                            tiles_per_split=tiles_per_split,
                            block_rows=block_rows, valid_rows=rows,
                            needs_mask=needs_mask, max_block=max_block)

        planes = jnp.sum(parts, axis=0)                    # (3, 8, 128)
        sq_zero = jnp.sum(planes[0])
        sq_nonzero = jnp.sum(planes[1])
        n_nonzero = jnp.sum(planes[2].astype(jnp.int32))   # exact int count
        n_zero = jnp.int32(n_elem) - n_nonzero

        # MSE over rows of 4 columns (only the value column differs);
        # empty subset (NaN in torch) -> 0.
        zero_loss = jnp.where(
            n_zero > 0, sq_zero / (4.0 * n_zero.astype(jnp.float32)), 0.0)
        nonzero_loss = jnp.where(
            n_nonzero > 0,
            sq_nonzero / (4.0 * n_nonzero.astype(jnp.float32)), 0.0)
        return (self.zero_weighting * zero_loss
                + self.nonzero_weighting * nonzero_loss)


def _reference_loss(recon, target):
    r = recon.reshape(-1).astype(jnp.float32)
    t = target.reshape(-1).astype(jnp.float32)
    d2 = (r - t) ** 2
    zero_m = t == 0.0
    nz_m = ~zero_m
    n0 = jnp.sum(zero_m)
    n1 = jnp.sum(nz_m)
    zl = jnp.where(n0 > 0, jnp.sum(jnp.where(zero_m, d2, 0.0)) / (4.0 * n0), 0.0)
    nl = jnp.where(n1 > 0, jnp.sum(jnp.where(nz_m, d2, 0.0)) / (4.0 * n1), 0.0)
    return zl + nl


def _make_inputs(key, b, m, n, dtype=jnp.float32):
    k1, k2 = jax.random.split(key)
    reconstructed = jax.random.normal(k1, (b, m, n), dtype=jnp.float32)
    raw = jax.random.normal(k2, (b, m, n), dtype=jnp.float32)
    # Sparse-ish target: mostly exact zeros (like hit-count images).
    target = jnp.where(jnp.abs(raw) > 0.85, raw, 0.0)
    return reconstructed.astype(dtype), target.astype(dtype)


if __name__ == "__main__":
    key = jax.random.PRNGKey(0)
    keys = jax.random.split(key, 3)

    # Case 1: small, lane-aligned, exact 2-way tiling (no masking path).
    b1, m1, n1 = 4, 32, 32  # 4096 elements -> 32 rows of 128
    rec1, tgt1 = _make_inputs(keys[0], b1, m1, n1)
    loss1 = NEWESTACB3dloss2024(b1, m1, n1)(rec1, tgt1)
    jax.block_until_ready(loss1)
    ref1 = _reference_loss(rec1, tgt1)
    assert jnp.allclose(loss1, ref1, rtol=1e-4, atol=1e-6), (loss1, ref1)

    # Case 2: not a multiple of 128 -> lane pad + in-kernel row masking.
    b2, m2, n2 = 3, 100, 37  # 11100 elements -> 87 rows, 2 partial tiles
    rec2, tgt2 = _make_inputs(keys[1], b2, m2, n2)
    loss2 = NEWESTACB3dloss2024(b2, m2, n2)(rec2, tgt2)
    jax.block_until_ready(loss2)
    ref2 = _reference_loss(rec2, tgt2)
    assert jnp.allclose(loss2, ref2, rtol=1e-4, atol=1e-6), (loss2, ref2)

    # Case 3: bf16 inputs streamed natively (in-kernel upcast to f32).
    b3, m3, n3 = 4, 64, 96  # 24576 elements -> 192 rows
    rec3, tgt3 = _make_inputs(keys[2], b3, m3, n3, dtype=jnp.bfloat16)
    loss3 = NEWESTACB3dloss2024(b3, m3, n3)(rec3, tgt3)
    jax.block_until_ready(loss3)
    ref3 = _reference_loss(rec3, tgt3)
    assert jnp.allclose(loss3, ref3, rtol=1e-3, atol=1e-6), (loss3, ref3)

    print("KERNEL_OK")
</pallas_src>

<mosaic_0001>
module attributes {stable_mosaic.version = 11 : i64} {
  func.func @_loss_kernel(%arg0: i32, %arg1: i32, %arg2: memref<16x128xf32, #tpu.memory_space<vmem>>, %arg3: memref<16x128xf32, #tpu.memory_space<vmem>>, %arg4: memref<1x3x8x128xf32, #tpu.memory_space<vmem>>) attributes {dimension_semantics = [#tpu.dimension_semantics<parallel>, #tpu.dimension_semantics<arbitrary>], iteration_bounds = array<i64: 2, 1>, scalar_prefetch = 0 : i64, scratch_operands = 0 : i64, tpu.core_type = #tpu.core_type<tc>, window_params = [{transform_indices = @transform_0, window_bounds = array<i64: 16, 128>}, {transform_indices = @transform_1, window_bounds = array<i64: 16, 128>}, {transform_indices = @transform_2, window_bounds = array<i64: 1, 3, 8, 128>}]} {
    %c0_i32 = arith.constant 0 : i32
    %0 = arith.cmpi eq, %arg1, %c0_i32 : i32
    %1 = arith.extui %0 : i1 to i32
    %c0_i32_0 = arith.constant 0 : i32
    %2 = arith.cmpi ne, %1, %c0_i32_0 : i32
    scf.if %2 {
      %cst_34 = arith.constant 0.000000e+00 : f32
      %41 = vector.broadcast %cst_34 : f32 to vector<1x3x8x128xf32>
      %c0_35 = arith.constant 0 : index
      %c0_36 = arith.constant 0 : index
      %c0_37 = arith.constant 0 : index
      %c0_38 = arith.constant 0 : index
      %42 = vector.load %arg4[%c0_35, %c0_36, %c0_37, %c0_38] : memref<1x3x8x128xf32, #tpu.memory_space<vmem>>, vector<1x3x8x128xf32>
      tpu.vector_store %arg4[%c0_35, %c0_36, %c0_37, %c0_38], %41 {strides = array<i32>} : memref<1x3x8x128xf32, #tpu.memory_space<vmem>>, vector<1x3x8x128xf32>,
    } else {
    }
    %c0 = arith.constant 0 : index
    %c0_1 = arith.constant 0 : index
    %3 = vector.load %arg2[%c0, %c0_1] : memref<16x128xf32, #tpu.memory_space<vmem>>, vector<16x128xf32>
    %c0_2 = arith.constant 0 : index
    %c0_3 = arith.constant 0 : index
    %4 = vector.load %arg3[%c0_2, %c0_3] : memref<16x128xf32, #tpu.memory_space<vmem>>, vector<16x128xf32>
    %5 = arith.subf %3, %4 : vector<16x128xf32>
    %6 = arith.mulf %5, %5 : vector<16x128xf32>
    %cst = arith.constant 0.000000e+00 : f32
    %7 = vector.broadcast %cst : f32 to vector<16x128xf32>
    %8 = arith.cmpf oeq, %4, %7 : vector<16x128xf32>
    %cst_4 = arith.constant dense<true> : vector<16x128xi1>
    %9 = arith.xori %8, %cst_4 : vector<16x128xi1>
    %c0_5 = arith.constant 0 : index
    %c0_6 = arith.constant 0 : index
    %c0_7 = arith.constant 0 : index
    %c0_8 = arith.constant 0 : index
    %10 = vector.load %arg4[%c0_5, %c0_6, %c0_7, %c0_8] : memref<1x3x8x128xf32, #tpu.memory_space<vmem>>, vector<1x1x8x128xf32>
    %11 = vector.shape_cast %10 : vector<1x1x8x128xf32> to vector<8x128xf32>
    %cst_9 = arith.constant 0.000000e+00 : f32
    %12 = vector.broadcast %cst_9 : f32 to vector<16x128xf32>
    %13 = arith.select %8, %6, %12 : vector<16x128xi1>, vector<16x128xf32>
    %14 = vector.shape_cast %13 : vector<16x128xf32> to vector<2x8x128xf32>
    %cst_10 = arith.constant dense<0.000000e+00> : vector<8x128xf32>
    %15 = vector.multi_reduction <add>, %14, %cst_10 [0] : vector<2x8x128xf32> to vector<8x128xf32>
    %16 = arith.addf %11, %15 : vector<8x128xf32>
    %c0_11 = arith.constant 0 : index
    %c0_12 = arith.constant 0 : index
    %c0_13 = arith.constant 0 : index
    %c0_14 = arith.constant 0 : index
    %17 = vector.load %arg4[%c0_11, %c0_12, %c0_13, %c0_14] : memref<1x3x8x128xf32, #tpu.memory_space<vmem>>, vector<1x1x8x128xf32>
    %18 = vector.shape_cast %17 : vector<1x1x8x128xf32> to vector<8x128xf32>
    %19 = vector.shape_cast %16 : vector<8x128xf32> to vector<1x1x8x128xf32>
    tpu.vector_store %arg4[%c0_11, %c0_12, %c0_13, %c0_14], %19 {strides = array<i32>} : memref<1x3x8x128xf32, #tpu.memory_space<vmem>>, vector<1x1x8x128xf32>,
    %c0_15 = arith.constant 0 : index
    %c1 = arith.constant 1 : index
    %c0_16 = arith.constant 0 : index
    %c0_17 = arith.constant 0 : index
    %20 = vector.load %arg4[%c0_15, %c1, %c0_16, %c0_17] : memref<1x3x8x128xf32, #tpu.memory_space<vmem>>, vector<1x1x8x128xf32>
    %21 = vector.shape_cast %20 : vector<1x1x8x128xf32> to vector<8x128xf32>
    %cst_18 = arith.constant 0.000000e+00 : f32
    %22 = vector.broadcast %cst_18 : f32 to vector<16x128xf32>
    %23 = arith.select %9, %6, %22 : vector<16x128xi1>, vector<16x128xf32>
    %24 = vector.shape_cast %23 : vector<16x128xf32> to vector<2x8x128xf32>
    %cst_19 = arith.constant dense<0.000000e+00> : vector<8x128xf32>
    %25 = vector.multi_reduction <add>, %24, %cst_19 [0] : vector<2x8x128xf32> to vector<8x128xf32>
    %26 = arith.addf %21, %25 : vector<8x128xf32>
    %c0_20 = arith.constant 0 : index
    %c1_21 = arith.constant 1 : index
    %c0_22 = arith.constant 0 : index
    %c0_23 = arith.constant 0 : index
    %27 = vector.load %arg4[%c0_20, %c1_21, %c0_22, %c0_23] : memref<1x3x8x128xf32, #tpu.memory_space<vmem>>, vector<1x1x8x128xf32>
    %28 = vector.shape_cast %27 : vector<1x1x8x128xf32> to vector<8x128xf32>
    %29 = vector.shape_cast %26 : vector<8x128xf32> to vector<1x1x8x128xf32>
    tpu.vector_store %arg4[%c0_20, %c1_21, %c0_22, %c0_23], %29 {strides = array<i32>} : memref<1x3x8x128xf32, #tpu.memory_space<vmem>>, vector<1x1x8x128xf32>,
    %c0_24 = arith.constant 0 : index
    %c2 = arith.constant 2 : index
    %c0_25 = arith.constant 0 : index
    %c0_26 = arith.constant 0 : index
    %30 = vector.load %arg4[%c0_24, %c2, %c0_25, %c0_26] : memref<1x3x8x128xf32, #tpu.memory_space<vmem>>, vector<1x1x8x128xf32>
    %31 = vector.shape_cast %30 : vector<1x1x8x128xf32> to vector<8x128xf32>
    %cst_27 = arith.constant 1.000000e+00 : f32
    %cst_28 = arith.constant 0.000000e+00 : f32
    %32 = vector.broadcast %cst_27 : f32 to vector<16x128xf32>
    %33 = vector.broadcast %cst_28 : f32 to vector<16x128xf32>
    %34 = arith.select %9, %32, %33 : vector<16x128xi1>, vector<16x128xf32>
    %35 = vector.shape_cast %34 : vector<16x128xf32> to vector<2x8x128xf32>
    %cst_29 = arith.constant dense<0.000000e+00> : vector<8x128xf32>
    %36 = vector.multi_reduction <add>, %35, %cst_29 [0] : vector<2x8x128xf32> to vector<8x128xf32>
    %37 = arith.addf %31, %36 : vector<8x128xf32>
    %c0_30 = arith.constant 0 : index
    %c2_31 = arith.constant 2 : index
    %c0_32 = arith.constant 0 : index
    %c0_33 = arith.constant 0 : index
    %38 = vector.load %arg4[%c0_30, %c2_31, %c0_32, %c0_33] : memref<1x3x8x128xf32, #tpu.memory_space<vmem>>, vector<1x1x8x128xf32>
    %39 = vector.shape_cast %38 : vector<1x1x8x128xf32> to vector<8x128xf32>
    %40 = vector.shape_cast %37 : vector<8x128xf32> to vector<1x1x8x128xf32>
    tpu.vector_store %arg4[%c0_30, %c2_31, %c0_32, %c0_33], %40 {strides = array<i32>} : memref<1x3x8x128xf32, #tpu.memory_space<vmem>>, vector<1x1x8x128xf32>,
    return
  }
  func.func @transform_0(%arg0: i32, %arg1: i32) -> (i32, i32) {
    %c1_i32 = arith.constant 1 : i32
    %0 = arith.muli %arg0, %c1_i32 : i32
    %1 = arith.addi %0, %arg1 : i32
    %c1_i32_0 = arith.constant 1 : i32
    %2 = arith.minsi %1, %c1_i32_0 : i32
    %c0_i32 = arith.constant 0 : i32
    %c0_i32_1 = arith.constant 0 : i32
    return %2, %c0_i32 : i32, i32
  }
  func.func @transform_1(%arg0: i32, %arg1: i32) -> (i32, i32) {
    %c1_i32 = arith.constant 1 : i32
    %0 = arith.muli %arg0, %c1_i32 : i32
    %1 = arith.addi %0, %arg1 : i32
    %c1_i32_0 = arith.constant 1 : i32
    %2 = arith.minsi %1, %c1_i32_0 : i32
    %c0_i32 = arith.constant 0 : i32
    %c0_i32_1 = arith.constant 0 : i32
    return %2, %c0_i32 : i32, i32
  }
  func.func @transform_2(%arg0: i32, %arg1: i32) -> (i32, i32, i32, i32) {
    %c0_i32 = arith.constant 0 : i32
    %c0_i32_0 = arith.constant 0 : i32
    %c0_i32_1 = arith.constant 0 : i32
    %c0_i32_2 = arith.constant 0 : i32
    return %arg0, %c0_i32, %c0_i32_0, %c0_i32_1 : i32, i32, i32, i32
  }
}

</mosaic_0001>

<bundles_post_ra>
// kernel: a_call__.1
= control target key start
LH: loop header
LB: loop body
LE: loop exit
PB: predicated region body
PF: predicated region fallthrough
CT: control target
= control target key end

     0   :  { %s420_s9 = smov 0   ;;  %s422_s10 = smov 0   ;;  %s456_s0 = inlined_call_operand.vmem [shape: f32[32,128], index: 0, kind: input, shape index: {}]   ;;  %s457_s1 = inlined_call_operand.vmem [shape: f32[32,128], index: 1, kind: input, shape index: {}]   ;;  %s458_s2 = inlined_call_operand.vmem [shape: f32[2,3,8,128], index: 2, kind: output, shape index: {}]  }
   0x1   :  { %s424_s11 = smov 0  }
   0x2 LB: > { %s24_s12 = sadd.s32 1, %s397_s10  ;;  %p340_p0 = scmp.ge.s32.totalorder %s401_s11, 1  ;;  %s401_s11 = sphi %s424_s11, %s12_s11   ;;  %s397_s10 = sphi %s422_s10, %s460_s10   ;;  %s393_s9 = sphi %s420_s9, %s459_s9  }
   0x3   : > { %p26_p1 = scmp.ge.s32.totalorder %s24_s12, 2  ;;  %p160_p2 = scmp.lt.s32.totalorder %s401_s11, 3 }
   0x5   : > { %s462_s12 = smov (%p26_p1, %s24_s12), 0  ;;  %p161_p3 = pnand %p340_p0, %p160_p2 }
   0x6   : > { %p194_p4 = scmp.lt.s32.totalorder (!%p161_p3), %s393_s9, 1 }
   0x7   : > { %164 = sbr.rel (%p161_p3) target bundleno = 30 (0x1e), region = 28 }
   0xc   : > { %s464_s9 = smov (!%p194_p4, %s393_s9), 1  ;;  %vm403_vm2 = vmmov 1   ;;  %v404_v7 = vmov 0.0  }
   0xd   : > { %s341_s13 = sshll.u32 %s464_s9, 1  ;;  %s352_s21 = smul.u32 24, %s464_s9 }
   0xe   : > { %p197_p5 = scmp.lt.s32.totalorder %s341_s13, 3 }
   0xf   : > { %s221_s24 = scalar_lea.vmem %s458_s2, %s352_s21 }
  0x10   : > { %s466_s13 = smov (!%p197_p5, %s341_s13), 3 }
  0x11   : > { %s342_s14 = sshll.u32 %s466_s13, 3 }
  0x12   : > { %s200_s17 = scalar_lea.vmem %s456_s0, %s342_s14  ;;  %s212_s20 = scalar_lea.vmem %s457_s1, %s342_s14 }
  0x13   : > { %v229_v0 = vld [vmem:[%s200_s17] sm:$0xff]  ;;  %v230_v1 = vld [vmem:[%s200_s17 + $0x8] sm:$0xff] }
  0x14   : > { %v231_v2 = vld [vmem:[%s212_s20] sm:$0xff]  ;;  %v232_v3 = vld [vmem:[%s212_s20 + $0x8] sm:$0xff] }
  0x15   : > { %v233_v4 = vsub.f32 %v229_v0, %v231_v2  ;;  %vm237_vm0 = vcmp.eq.f32.partialorder %v231_v2, 0.0  ;;  %v234_v5 = vsub.f32 %v230_v1, %v232_v3  ;;  %vm238_vm1 = vcmp.eq.f32.partialorder %v232_v3, 0.0 }
  0x16   : > { %vm239_vm3 = vmxor %vm237_vm0, %vm403_vm2 }
  0x17   : > { %v235_v6 = vmul.f32 %v233_v4, %v233_v4  ;;  %vm240_vm4 = vmxor %vm238_vm1, %vm403_vm2  ;;  %v256_v8 = vsel %vm239_vm3, 1.0, %v404_v7  ;;  %v236_v9 = vmul.f32 %v234_v5, %v234_v5 }
  0x18   : > { %v257_v10 = vsel %vm240_vm4, 1.0, %v404_v7 }
  0x19   : > { %v242_v11 = vsel %vm237_vm0, %v235_v6, 0.0  ;;  %v249_v12 = vsel %vm239_vm3, %v235_v6, 0.0  ;;  %v258_v13 = vadd.f32 %v257_v10, %v256_v8  ;;  %v243_v14 = vsel %vm238_vm1, %v236_v9, 0.0 }
  0x1a   : > { %v250_v15 = vsel %vm240_vm4, %v236_v9, 0.0  ;;  %v244_v16 = vadd.f32 %v243_v14, %v242_v11 }
  0x1b   : > { %v251_v17 = vadd.f32 %v250_v15, %v249_v12  ;;  %349 = vst [vmem:[%s221_s24 + $0x10] sm:$0xff] %v258_v13 }
  0x1c   : > { %246 = vst [vmem:[%s221_s24] sm:$0xff] %v244_v16 }
  0x1d   : > { %347 = vst [vmem:[%s221_s24 + $0x8] sm:$0xff] %v251_v17 }
  0x1e PF: > { %s12_s11 = sadd.s32 1, %s401_s11   ;;  %s459_s9 = smov %s397_s10 }
  0x1f   : > { %p9_p6 = scmp.ge.s32.totalorder %s12_s11, 4   ;;  %s460_s10 = smov %s462_s12 }
  0x21   :  { %11 = sbr.rel (!%p9_p6) target bundleno = 2 (0x2), region = 67 }

</bundles_post_ra>
